<compile_context>
chip_gen: v6e
topology: v6e:2x2x1
jax: 0.10.0
libtpu: 0.0.40
codegen_flags: <defaults>
</compile_context>

<pallas_src>
import jax
import jax.numpy as jnp
from jax.experimental import pallas as pl
from jax.experimental.pallas import tpu as pltpu


def _round_up(x, m):
    return ((x + m - 1) // m) * m


def clip_vision_embeddings_kernel(x_ref, w_ref, add_ref, o_ref):
    # x_ref  : (1, ts, K)  im2col'd pixel patches; row 0 of the real sequence
    #                      is all zeros -> becomes the class-token slot.
    # w_ref  : (K, D)      patch_embedding conv weight reshaped to [C*P*P, D]
    # add_ref: (ts, D)     position embedding rows (class embedding folded in row 0)
    # o_ref  : (1, ts, D)
    acc = jnp.dot(x_ref[0], w_ref[...], preferred_element_type=jnp.float32)
    acc = acc + add_ref[...].astype(jnp.float32)
    o_ref[0] = acc.astype(o_ref.dtype)


def clip_vision_embeddings(pixel_values, patch_weight, class_embedding,
                           position_embedding, *, seq_tile=None):
    """Pallas TPU implementation of CLIPVisionEmbeddings.forward.

    pixel_values      : [B, C, H, W]
    patch_weight      : [D, C, P, P]   (torch Conv2d weight layout, bias-free)
    class_embedding   : [D]
    position_embedding: [num_positions, D]  (nn.Embedding weight)
    returns           : [B, num_patches + 1, D]
    """
    B, C, H, W = pixel_values.shape
    D, Cw, P, Pw = patch_weight.shape
    assert C == Cw and P == Pw and H % P == 0 and W % P == 0
    GH, GW = H // P, W // P
    NP = GH * GW
    S = NP + 1
    K = C * P * P
    assert position_embedding.shape == (S, D)

    param_dtype = patch_weight.dtype  # torch: pixel_values.to(target_dtype)

    # im2col: non-overlapping patches, flattened in (c, i, j) order so the
    # contraction matches the conv weight's [D, C, P, P] flattening.
    x = pixel_values.astype(param_dtype)
    x = x.reshape(B, C, GH, P, GW, P).transpose(0, 2, 4, 1, 3, 5)
    x = x.reshape(B, NP, K)

    # Ragged seq handling: pick one 8-aligned seq tile per batch element
    # (CLIP seq lens 50/197/257/577 are not multiples of 128).
    if seq_tile is None:
        seq_tile = min(_round_up(S, 8), 1024)
    ts = _round_up(min(seq_tile, _round_up(S, 8)), 8)
    S_pad = _round_up(S, ts)

    # Fold the class-token concat AND the tail alignment padding into a single
    # pad pass: one zero row at the front (class-token slot) + zero tail rows.
    x = jnp.pad(x, ((0, 0), (1, S_pad - S), (0, 0)))                  # [B, S_pad, K]

    # Add table: position embeddings with the class embedding folded into row 0.
    add_table = position_embedding.astype(param_dtype)
    add_table = add_table.at[0].add(class_embedding.astype(param_dtype))
    if S_pad != S:
        add_table = jnp.pad(add_table, ((0, S_pad - S), (0, 0)))      # [S_pad, D]

    # Conv weight [D, C, P, P] -> [K, D] for a plain row-major MXU matmul.
    w = patch_weight.reshape(D, K).T

    itemsize = jnp.dtype(param_dtype).itemsize
    # VMEM budget: double-buffered x / add / out tiles + (possibly
    # double-buffered) resident weight + slack.  Capped at v7x physical VMEM.
    vmem_bytes = (2 * ts * K + 4 * ts * D) * itemsize + 2 * K * D * itemsize
    vmem_bytes = min(max(vmem_bytes + (4 << 20), 16 << 20), 64 << 20)

    cost = pl.CostEstimate(
        flops=2 * B * S_pad * K * D,
        transcendentals=0,
        bytes_accessed=(B * S_pad * K + K * D + S_pad * D + B * S_pad * D) * itemsize,
    )

    out = pl.pallas_call(
        clip_vision_embeddings_kernel,
        out_shape=jax.ShapeDtypeStruct((B, S_pad, D), param_dtype),
        grid_spec=pltpu.PrefetchScalarGridSpec(
            num_scalar_prefetch=0,
            grid=(B, S_pad // ts),
            in_specs=[
                pl.BlockSpec((1, ts, K), lambda b, s: (b, s, 0)),   # patches
                pl.BlockSpec((K, D), lambda b, s: (0, 0)),          # weight (resident)
                pl.BlockSpec((ts, D), lambda b, s: (s, 0)),         # pos(+cls) add table
            ],
            out_specs=pl.BlockSpec((1, ts, D), lambda b, s: (b, s, 0)),
        ),
        compiler_params=pltpu.CompilerParams(
            dimension_semantics=("parallel", "parallel"),
            vmem_limit_bytes=vmem_bytes,
        ),
        cost_estimate=cost,
    )(x, w, add_table)

    return out[:, :S, :]


def reference_clip_vision_embeddings(pixel_values, patch_weight,
                                     class_embedding, position_embedding):
    """Pure-JAX reference mirroring the PyTorch module (conv path)."""
    B = pixel_values.shape[0]
    D, _, P, _ = patch_weight.shape
    dt = patch_weight.dtype
    patch_embeds = jax.lax.conv_general_dilated(
        pixel_values.astype(dt), patch_weight,
        window_strides=(P, P), padding="VALID",
        dimension_numbers=("NCHW", "OIHW", "NCHW"))              # [B, D, GH, GW]
    patch_embeds = patch_embeds.reshape(B, D, -1).transpose(0, 2, 1)  # [B, NP, D]
    class_embeds = jnp.broadcast_to(class_embedding.astype(dt), (B, 1, D))
    emb = jnp.concatenate([class_embeds, patch_embeds], axis=1)
    emb = emb + position_embedding.astype(dt)[None]
    return emb


if __name__ == "__main__":
    # Small config consistent with CLIPVisionEmbeddings:
    # image_size=32, patch_size=8 -> 16 patches + 1 class token, hidden=128.
    batch, channels, image_size, patch_size, hidden = 2, 3, 32, 8, 128
    num_patches = (image_size // patch_size) ** 2
    num_positions = num_patches + 1

    key = jax.random.PRNGKey(0)
    kpx, kw, kcls, kpos = jax.random.split(key, 4)
    pixel_values = jax.random.normal(
        kpx, (batch, channels, image_size, image_size), dtype=jnp.float32)
    patch_weight = jax.random.normal(
        kw, (hidden, channels, patch_size, patch_size), dtype=jnp.float32) * 0.02
    class_embedding = jax.random.normal(kcls, (hidden,), dtype=jnp.float32)
    position_embedding = jax.random.normal(
        kpos, (num_positions, hidden), dtype=jnp.float32) * 0.02

    out = clip_vision_embeddings(pixel_values, patch_weight,
                                 class_embedding, position_embedding)
    out = jax.block_until_ready(out)

    ref = reference_clip_vision_embeddings(pixel_values, patch_weight,
                                           class_embedding, position_embedding)
    assert out.shape == (batch, num_positions, hidden)
    # Tolerance covers MXU default-precision rounding differences between the
    # kernel matmul and XLA's conv lowering (both default-precision on TPU).
    assert jnp.allclose(out, ref, atol=5e-3, rtol=5e-3), "mismatch vs reference"

    print("KERNEL_OK")
</pallas_src>

<mosaic_0001>
module attributes {stable_mosaic.version = 11 : i64} {
  func.func @clip_vision_embeddings_kernel(%arg0: i32, %arg1: i32, %arg2: memref<1x24x192xf32, #tpu.memory_space<vmem>>, %arg3: memref<192x128xf32, #tpu.memory_space<vmem>>, %arg4: memref<24x128xf32, #tpu.memory_space<vmem>>, %arg5: memref<1x24x128xf32, #tpu.memory_space<vmem>>) attributes {dimension_semantics = [#tpu.dimension_semantics<parallel>, #tpu.dimension_semantics<parallel>], iteration_bounds = array<i64: 2, 1>, scalar_prefetch = 0 : i64, scratch_operands = 0 : i64, tpu.core_type = #tpu.core_type<tc>, window_params = [{transform_indices = @transform_0, window_bounds = array<i64: 1, 24, 192>}, {pipeline_mode = #tpu.pipeline_mode<synchronous>, transform_indices = @transform_1, window_bounds = array<i64: 192, 128>}, {transform_indices = @transform_2, window_bounds = array<i64: 24, 128>}, {transform_indices = @transform_3, window_bounds = array<i64: 1, 24, 128>}]} {
    %c0 = arith.constant 0 : index
    %c0_0 = arith.constant 0 : index
    %c0_1 = arith.constant 0 : index
    %0 = vector.load %arg2[%c0, %c0_0, %c0_1] : memref<1x24x192xf32, #tpu.memory_space<vmem>>, vector<1x24x192xf32>
    %1 = vector.shape_cast %0 : vector<1x24x192xf32> to vector<24x192xf32>
    %c0_2 = arith.constant 0 : index
    %c0_3 = arith.constant 0 : index
    %2 = vector.load %arg3[%c0_2, %c0_3] : memref<192x128xf32, #tpu.memory_space<vmem>>, vector<192x128xf32>
    %cst = arith.constant dense<0.000000e+00> : vector<24x128xf32>
    %3 = tpu.matmul %1, %2, %cst {dimension_numbers = #tpu.dot_dimension_numbers<[1], [0], [0], [1], [0, 0, 1, 1], [], []>} : vector<24x192xf32>, vector<192x128xf32>, vector<24x128xf32> -> vector<24x128xf32>
    %c0_4 = arith.constant 0 : index
    %c0_5 = arith.constant 0 : index
    %4 = vector.load %arg4[%c0_4, %c0_5] : memref<24x128xf32, #tpu.memory_space<vmem>>, vector<24x128xf32>
    %5 = arith.addf %3, %4 : vector<24x128xf32>
    %c0_6 = arith.constant 0 : index
    %c0_7 = arith.constant 0 : index
    %c0_8 = arith.constant 0 : index
    %6 = vector.load %arg5[%c0_6, %c0_7, %c0_8] : memref<1x24x128xf32, #tpu.memory_space<vmem>>, vector<1x24x128xf32>
    %7 = vector.shape_cast %6 : vector<1x24x128xf32> to vector<24x128xf32>
    %8 = vector.shape_cast %5 : vector<24x128xf32> to vector<1x24x128xf32>
    tpu.vector_store %arg5[%c0_6, %c0_7, %c0_8], %8 {strides = array<i32>} : memref<1x24x128xf32, #tpu.memory_space<vmem>>, vector<1x24x128xf32>,
    return
  }
  func.func @transform_0(%arg0: i32, %arg1: i32) -> (i32, i32, i32) {
    %c0_i32 = arith.constant 0 : i32
    %c0_i32_0 = arith.constant 0 : i32
    return %arg0, %arg1, %c0_i32 : i32, i32, i32
  }
  func.func @transform_1(%arg0: i32, %arg1: i32) -> (i32, i32) {
    %c0_i32 = arith.constant 0 : i32
    %c0_i32_0 = arith.constant 0 : i32
    %c0_i32_1 = arith.constant 0 : i32
    return %c0_i32, %c0_i32_0 : i32, i32
  }
  func.func @transform_2(%arg0: i32, %arg1: i32) -> (i32, i32) {
    %c0_i32 = arith.constant 0 : i32
    %c0_i32_0 = arith.constant 0 : i32
    return %arg1, %c0_i32 : i32, i32
  }
  func.func @transform_3(%arg0: i32, %arg1: i32) -> (i32, i32, i32) {
    %c0_i32 = arith.constant 0 : i32
    %c0_i32_0 = arith.constant 0 : i32
    return %arg0, %arg1, %c0_i32 : i32, i32, i32
  }
}

</mosaic_0001>

<bundles_post_ra>
// kernel: tpu_custom_call.1
= control target key start
LH: loop header
LB: loop body
LE: loop exit
PB: predicated region body
PF: predicated region fallthrough
CT: control target
= control target key end

     0   :  { %8 = vsyncpa [#allocation3], 0  ;;  %s1100_s0 = inlined_call_operand.hbm [shape: f32[2,24,192], index: 0, kind: input, shape index: {}]   ;;  %s1101_s1 = inlined_call_operand.hbm [shape: f32[192,128], index: 1, kind: input, shape index: {}]   ;;  %s1102_s2 = inlined_call_operand.hbm [shape: f32[24,128], index: 2, kind: input, shape index: {}]   ;;  %s1103_s3 = inlined_call_operand.hbm [shape: f32[2,24,128], index: 3, kind: output, shape index: {}]  }
   0x1   :  { %10 = vsyncpa [#allocation3 + $0x1], 0 }
   0x2   :  { %11 = vsyncpa [#allocation6], 0 }
   0x3   :  { %12 = vsyncpa [#allocation4], 0 }
   0x4   :  { %14 = vsyncpa [#allocation4 + $0x1], 0  ;;  %s854_s12 = smov 0   ;;  %s856_s13 = smov 0  }
   0x5   :  { %s858_s14 = smov 0   ;;  %s860_s15 = smov 0  }
   0x6   :  { %s862_s16 = smov 0   ;;  %s864_s17 = smov 0  }
   0x7 LB: > { %s498_s18 = sadd.s32 4294967295, %s821_s17   ;;  %s499_s19 = sadd.s32 4294967294, %s821_s17   ;;  %s821_s17 = sphi %s864_s17, %s20_s17   ;;  %s817_s16 = sphi %s862_s16, %s1123_s16   ;;  %s813_s15 = sphi %s860_s15, %s1122_s15   ;;  %s809_s14 = sphi %s858_s14, %s1121_s14   ;;  %s805_s13 = sphi %s856_s13, %s1120_s13   ;;  %s801_s12 = sphi %s854_s12, %s1119_s12  }
   0x8   : > { %p54_p0 = scmp.ne.s32.totalorder %s805_s13, %s801_s12  ;;  %p888_p1 = scmp.eq.s32.totalorder %s498_s18, 0 }
   0x9   : > { %p892_p2 = scmp.eq.s32.totalorder %s498_s18, 1  ;;  %p133_p3 = scmp.eq.s32.totalorder %s499_s19, 1 }
   0xa   : > { %s1107_s20 = scalar_select %p888_p1, 1, 0 }
   0xb   : > { %p898_p4 = por %p888_p1, %p54_p0  ;;  %p500_p5 = scmp.ge.s32.totalorder %s821_s17, 1 }
   0xc   : > { %p903_p6 = por %p133_p3, %p54_p0  ;;  %p140_p7 = scmp.lt.s32.totalorder %s821_s17, 3 }
   0xd   : > { %s1109_s22 = scalar_select %p898_p4, 1, 0 }
   0xe   : > { %s1110_s23 = scalar_select %p903_p6, 1, 0 }
   0xf   : > { %p908_p8 = pnand %p500_p5, %p140_p7  ;;  %s823_s25 = smov [#allocation5]  }
  0x10   : > { %s152_s26 = sshll.u32 %s823_s25, 4  ;;  %s824_s28 = smov [#allocation7]   ;;  %s153_s26 = int_to_ptr.vmem [resolvable:$true] %s152_s26 }
  0x11   : > { %p579_p9 = pneg %p908_p8  ;;  %s168_s29 = sshll.u32 %s824_s28, 4  ;;  %s169_s29 = int_to_ptr.vmem [resolvable:$true] %s168_s29 }
  0x12   : > { %s668_s30 = scalar_lea.vmem %s153_s26, 3072  ;;  %p676_p5 = scmp.lt.s32.totalorder %s153_s26, %s153_s26 }
  0x13   : > { %p917_p11 = pnand %p579_p9, %p888_p1  ;;  %p669_p13 = scmp.ne.s32.totalorder %s153_s26, %s668_s30 }
  0x14   : > { %p677_p7 = scmp.lt.s32.totalorder %s668_s30, %s668_s30 }
  0x15   : > { %p659_p12 = pneg %p917_p11 }
  0x16   : > { %p678_p10 = por %p677_p7, %p676_p5 }
  0x17   : > { %p671_p0 = pnand %p669_p13, %p659_p12 }
  0x19   : > { %p672_p3 = pneg %p671_p0 }
  0x1b   : > { %p679_p9 = pnand %p678_p10, %p672_p3 }
  0x1d   : > { %682 = shalt.err (!%p679_p9)
}
  0x1e   : > { %s825_s4 = smov 128   ;;  %s826_s5 = smov 8  }
  0x1f   : > { %582 = dma.hbm_to_vmem [thread:$0]  (!%p917_p11), %s1101_s1, 3072, %s153_s26, [#allocation6], %s825_s4, %s825_s4, %s826_s5  }
  0x20   : > { %s694_s8 = scalar_lea.vmem %s169_s29, 384  ;;  %p702_p1 = scmp.lt.s32.totalorder %s169_s29, %s169_s29 }
  0x21   : > { %p695_p6 = scmp.ne.s32.totalorder %s169_s29, %s694_s8  ;;  %p703_p4 = scmp.lt.s32.totalorder %s694_s8, %s694_s8 }
  0x23   : > { %p697_p13 = pnand %p695_p6, %p659_p12  ;;  %p704_p5 = por %p703_p4, %p702_p1 }
  0x25   : > { %p698_p0 = pneg %p697_p13 }
  0x27   : > { %p705_p10 = pnand %p704_p5, %p698_p0 }
  0x29   : > { %708 = shalt.err (!%p705_p10)
}
  0x2a   : > { %585 = dma.hbm_to_vmem [thread:$0]  (!%p917_p11), %s1102_s2, 384, %s169_s29, [#allocation6], %s825_s4, %s825_s4, %s826_s5  }
  0x2b   : > { %s32_s11 = sadd.s32 1, %s817_s16  ;;  %s41_s18 = sadd.s32 1, %s809_s14 }
  0x2c   : > { %p34_p1 = scmp.ge.s32.totalorder %s32_s11, 2  ;;  %p48_p4 = scmp.ne.s32.totalorder %s809_s14, %s805_s13 }
  0x2d   : > { %p49_p6 = scmp.eq.s32.totalorder %s821_s17, 0  ;;  %p596_p12 = scmp.lt.s32.totalorder %s821_s17, 2 }
  0x2e   : > { %s1125_s11 = smov (%p34_p1, %s32_s11), 0  ;;  %p949_p7 = por %p892_p2, %p48_p4 }
  0x2f   : > { %p50_p3 = por %p49_p6, %p48_p4  ;;  %s36_s25 = ssub.s32 %s817_s16, %s1125_s11 }
  0x30   : > { %s182_s26 = sand.u32 1, %s809_s14   ;;  %p39_p9 = scmp.eq.s32.totalorder %s36_s25, 0 }
  0x31   : > { %s562_s27 = smul.u32 48, %s182_s26  ;;  %p956_p11 = pnand %p596_p12, %p50_p3 }
  0x32   : > { %s961_s29 = scalar_select %p39_p9, %s809_s14, %s41_s18  }
  0x33   : > { %s563_s30 = smul.u32 768, %s817_s16  ;;  %s186_s4 = scalar_lea.vmem [#allocation2], %s562_s27 }
  0x34   : > { %s196_s5 = sshll.u32 %s186_s4, 4  ;;  %s183_s8 = scalar_lea.sflag [#allocation3], %s182_s26  ;;  %s197_s5 = int_to_ptr.vmem [resolvable:$true] %s196_s5 }
  0x35   : > { %s195_s7 = scalar_lea.hbm %s1100_s0, %s563_s30  ;;  %p711_p2 = pneg %p956_p11 }
  0x36   : > { %s722_s9 = scalar_lea.vmem %s197_s5, 768  ;;  %s827_s10 = smov [#allocation2]  }
  0x37   : > { %p723_p13 = scmp.ne.s32.totalorder %s197_s5, %s722_s9  ;;  %s727_s25 = sshll.u32 %s827_s10, 4  ;;  %s728_s25 = int_to_ptr.vmem [resolvable:$false] %s727_s25 }
  0x38   : > { %s729_s18 = scalar_lea.vmem %s728_s25, 1536  ;;  %p730_p10 = scmp.lt.s32.totalorder %s197_s5, %s728_s25 }
  0x39   : > { %p725_p0 = pnand %p723_p13, %p711_p2  ;;  %p731_p1 = scmp.lt.s32.totalorder %s729_s18, %s722_s9 }
  0x3b   : > { %p726_p5 = pneg %p725_p0  ;;  %p732_p4 = por %p731_p1, %p730_p10 }
  0x3d   : > { %p733_p6 = pnand %p732_p4, %p726_p5 }
  0x3f   : > { %736 = shalt.err (!%p733_p6)
}
  0x40   : > { %s828_s27 = smov 256   ;;  %s829_s30 = smov 16  }
  0x41   : > { %589 = dma.hbm_to_vmem [thread:$0]  (!%p956_p11), %s195_s7, 768, %s197_s5, %s183_s8, %s828_s27, %s828_s27, %s829_s30  }
  0x42   : > { %208 = sbr.rel (%p908_p8) target bundleno = 337 (0x151), region = 32  ;;  %s974_s26 = sand.u32 (!%p908_p8), 1, %s805_s13  }
  0x43   : > { %s564_s4 = smul.u32 (!%p908_p8), 48, %s974_s26  ;;  %s211_s6 = scalar_lea.sflag (!%p908_p8), [#allocation3], %s974_s26 }
  0x44   : > { %p1115_p12 = scmp.ne.s32.totalorder (!%p908_p8), %s1109_s22, 0 }
  0x45   : > { %s978_s21 = scalar_lea.vmem (!%p908_p8), [#allocation2], %s564_s4 }
  0x47   : > { %788 = dma.done.wait (%p1115_p12), %s211_s6, 768  }
  0x48   : > { %790 = vsyncadd (%p1115_p12), %s211_s6, 4294966528  ;;  %p1116_p3 = scmp.ne.s32.totalorder %s1107_s20, 0 }
  0x4a   : > { %792 = dma.done.wait (%p1116_p3), [#allocation6], 3456  }
  0x4b   : > { %794 = vsyncadd (%p1116_p3), [#allocation6], 4294963840  ;;  %v830_v0 = vmov 0.0   ;;  %v269_v1 = vld [vmem:[#allocation5 + $0x78] sm:$0xff]  ;;  %v268_v2 = vld [vmem:[#allocation5 + $0x70] sm:$0xff]  ;;  %vm281_vm0 = vcmask 523264  }
  0x4c   : > { %514 = vmatprep.subr.mxu1 %v830_v0  ;;  %291 = vmatprep.subr.mxu0 %v830_v0  ;;  %v267_v3 = vld [vmem:[#allocation5 + $0x68] sm:$0xff]  ;;  %v266_v4 = vld [vmem:[#allocation5 + $0x60] sm:$0xff]  ;;  %v265_v5 = vld [vmem:[#allocation5 + $0x58] sm:$0xff]  ;;  %s565_s20 = smul.u32 24, %s974_s26  ;;  %s831_s10 = smov [#allocation8]  }
  0x4d   : > { %538 = vmatpush1.msra.mxu1 %v269_v1  ;;  %292 = vmatpush1.msra.mxu0 %v269_v1  ;;  %v264_v6 = vld [vmem:[#allocation5 + $0x50] sm:$0xff]  ;;  %v263_v7 = vld [vmem:[#allocation5 + $0x48] sm:$0xff]  ;;  %v262_v8 = vld [vmem:[#allocation5 + $0x40] sm:$0xff]  ;;  %s566_s28 = smul.u32 384, %s813_s15  ;;  %s375_s15 = scalar_lea.sflag [#allocation4], %s974_s26 }
  0x4e   : > { %515 = vmatprep.subr.mxu1 %v830_v0  ;;  %293 = vmatprep.subr.mxu0 %v830_v0  ;;  %v261_v9 = vld [vmem:[#allocation5 + $0x38] sm:$0xff]  ;;  %v260_v10 = vld [vmem:[#allocation5 + $0x30] sm:$0xff]  ;;  %v259_v11 = vld [vmem:[#allocation5 + $0x28] sm:$0xff]  ;;  %s244_s22 = scalar_lea.vmem [#allocation8], %s565_s20  ;;  %s741_s25 = sshll.u32 %s831_s10, 4  ;;  %s742_s25 = int_to_ptr.vmem [resolvable:$false] %s741_s25 }
  0x4f   : > { %539 = vmatpush1.msra.mxu1 %v268_v2  ;;  %294 = vmatpush1.msra.mxu0 %v268_v2  ;;  %v258_v12 = vld [vmem:[#allocation5 + $0x20] sm:$0xff]  ;;  %v257_v13 = vld [vmem:[#allocation5 + $0x18] sm:$0xff]  ;;  %v256_v14 = vld [vmem:[#allocation5 + $0x10] sm:$0xff]  ;;  %s390_s24 = sshll.u32 %s244_s22, 4  ;;  %s1052_s8 = scalar_lea.hbm %s1103_s3, %s566_s28  ;;  %s1047_s24 = int_to_ptr.vmem [resolvable:$true] %s390_s24 }
  0x50   : > { %516 = vmatprep.subr.mxu1 %v830_v0  ;;  %295 = vmatprep.subr.mxu0 %v830_v0  ;;  %v255_v15 = vld [vmem:[#allocation5 + $0x8] sm:$0xff]  ;;  %v254_v16 = vld [vmem:[#allocation5] sm:$0xff]  ;;  %v277_v17 = vld [vmem:[#allocation5 + $0xb8] sm:$0xff]  ;;  %s737_s9 = scalar_lea.vmem %s1047_s24, 384  ;;  %s743_s18 = scalar_lea.vmem %s742_s25, 768 }
  0x51   : > { %540 = vmatpush1.msra.mxu1 %v267_v3  ;;  %296 = vmatpush1.msra.mxu0 %v267_v3  ;;  %v276_v18 = vld [vmem:[#allocation5 + $0xb0] sm:$0xff]  ;;  %v275_v19 = vld [vmem:[#allocation5 + $0xa8] sm:$0xff]  ;;  %v274_v20 = vld [vmem:[#allocation5 + $0xa0] sm:$0xff]  ;;  %p738_p8 = scmp.ne.s32.totalorder %s1047_s24, %s737_s9  ;;  %p744_p2 = scmp.lt.s32.totalorder %s1047_s24, %s742_s25 }
  0x52   : > { %517 = vmatprep.subr.mxu1 %v830_v0  ;;  %297 = vmatprep.subr.mxu0 %v830_v0  ;;  %v273_v21 = vld [vmem:[#allocation5 + $0x98] sm:$0xff]  ;;  %v272_v22 = vld [vmem:[#allocation5 + $0x90] sm:$0xff]  ;;  %v271_v23 = vld [vmem:[#allocation5 + $0x88] sm:$0xff]  ;;  %p745_p13 = scmp.lt.s32.totalorder %s743_s18, %s737_s9 }
  0x53   : > { %541 = vmatpush1.msra.mxu1 %v266_v4  ;;  %298 = vmatpush1.msra.mxu0 %v266_v4  ;;  %v251_v24 = vld [vmem:[%s978_s21 + $0x18] sm:$0xff]  ;;  %v270_v25 = vld [vmem:[#allocation5 + $0x80] sm:$0xff]  ;;  %v249_v27 = vld [vmem:[%s978_s21 + $0x8] sm:$0xff]  ;;  %p739_p9 = pnand %p738_p8, %p949_p7 }
  0x54   : > { %518 = vmatprep.subr.mxu1 %v830_v0  ;;  %299 = vmatprep.subr.mxu0 %v830_v0  ;;  %v250_v26 = vld [vmem:[%s978_s21 + $0x10] sm:$0xff]  ;;  %v253_v28 = vld [vmem:[%s978_s21 + $0x28] sm:$0xff]  ;;  %v248_v29 = vld [vmem:[%s978_s21] sm:$0xff]  ;;  %p746_p0 = por %p745_p13, %p744_p2 }
  0x55   : > { %542 = vmatpush1.msra.mxu1 %v265_v5  ;;  %300 = vmatpush1.msra.mxu0 %v265_v5  ;;  %v252_v30 = vld [vmem:[%s978_s21 + $0x20] sm:$0xff]  ;;  %v279_v31 = vld [vmem:[#allocation7 + $0x8] sm:$0xff]  ;;  %p740_p11 = pneg %p739_p9 }
  0x56   : > { %519 = vmatprep.subr.mxu1 %v830_v0  ;;  %301 = vmatprep.subr.mxu0 %v830_v0  ;;  %v278_v33 = vld [vmem:[#allocation7] sm:$0xff]  ;;  %v280_v37 = vld [vmem:[#allocation7 + $0x10] sm:$0xff] }
  0x57   : > { %543 = vmatpush1.msra.mxu1 %v264_v6  ;;  %302 = vmatpush1.msra.mxu0 %v264_v6  ;;  %p747_p5 = pnand %p746_p0, %p740_p11 }
  0x58   : > { %520 = vmatprep.subr.mxu1 %v830_v0  ;;  %303 = vmatprep.subr.mxu0 %v830_v0 }
  0x59   : > { %544 = vmatpush1.msra.mxu1 %v263_v7  ;;  %304 = vmatpush1.msra.mxu0 %v263_v7 }
  0x5a   : > { %521 = vmatprep.subr.mxu1 %v830_v0  ;;  %305 = vmatprep.subr.mxu0 %v830_v0 }
  0x5b   : > { %545 = vmatpush1.msra.mxu1 %v262_v8  ;;  %306 = vmatpush1.msra.mxu0 %v262_v8 }
  0x5c   : > { %522 = vmatprep.subr.mxu1 %v830_v0  ;;  %307 = vmatprep.subr.mxu0 %v830_v0 }
  0x5d   : > { %546 = vmatpush1.msra.mxu1 %v261_v9  ;;  %308 = vmatpush1.msra.mxu0 %v261_v9 }
  0x5e   : > { %523 = vmatprep.subr.mxu1 %v830_v0  ;;  %309 = vmatprep.subr.mxu0 %v830_v0 }
  0x5f   : > { %547 = vmatpush1.msra.mxu1 %v260_v10  ;;  %310 = vmatpush1.msra.mxu0 %v260_v10 }
  0x60   : > { %524 = vmatprep.subr.mxu1 %v830_v0  ;;  %311 = vmatprep.subr.mxu0 %v830_v0 }
  0x61   : > { %548 = vmatpush1.msra.mxu1 %v259_v11  ;;  %312 = vmatpush1.msra.mxu0 %v259_v11 }
  0x62   : > { %525 = vmatprep.subr.mxu1 %v830_v0  ;;  %313 = vmatprep.subr.mxu0 %v830_v0 }
  0x63   : > { %549 = vmatpush1.msra.mxu1 %v258_v12  ;;  %314 = vmatpush1.msra.mxu0 %v258_v12 }
  0x64   : > { %526 = vmatprep.subr.mxu1 %v830_v0  ;;  %315 = vmatprep.subr.mxu0 %v830_v0 }
  0x65   : > { %550 = vmatpush1.msra.mxu1 %v257_v13  ;;  %316 = vmatpush1.msra.mxu0 %v257_v13 }
  0x66   : > { %527 = vmatprep.subr.mxu1 %v830_v0  ;;  %317 = vmatprep.subr.mxu0 %v830_v0 }
  0x67   : > { %551 = vmatpush1.msra.mxu1 %v256_v14  ;;  %318 = vmatpush1.msra.mxu0 %v256_v14 }
  0x68   : > { %528 = vmatprep.subr.mxu1 %v830_v0  ;;  %319 = vmatprep.subr.mxu0 %v830_v0 }
  0x69   : > { %552 = vmatpush1.msra.mxu1 %v255_v15  ;;  %320 = vmatpush1.msra.mxu0 %v255_v15 }
  0x6a   : > { %529 = vmatprep.subr.mxu1 %v830_v0  ;;  %321 = vmatprep.subr.mxu0 %v830_v0 }
  0x6b   : > { %553 = vmatpush1.msra.mxu1 %v254_v16  ;;  %322 = vmatpush1.msra.mxu0 %v254_v16 }
  0x6c   : > { %530 = vmatprep.subr.mxu1 %v830_v0  ;;  %339 = vmatprep.subr.mxu0 %v830_v0 }
  0x6d   : > { %554 = vmatpush2.msra.mxu1 %v277_v17  ;;  %340 = vmatpush2.msra.mxu0 %v277_v17 }
  0x6e   : > { %531 = vmatprep.subr.mxu1 %v830_v0  ;;  %341 = vmatprep.subr.mxu0 %v830_v0 }
  0x6f   : > { %555 = vmatpush2.msra.mxu1 %v276_v18  ;;  %342 = vmatpush2.msra.mxu0 %v276_v18 }
  0x70   : > { %532 = vmatprep.subr.mxu1 %v830_v0  ;;  %343 = vmatprep.subr.mxu0 %v830_v0 }
  0x71   : > { %556 = vmatpush2.msra.mxu1 %v275_v19  ;;  %344 = vmatpush2.msra.mxu0 %v275_v19 }
  0x72   : > { %533 = vmatprep.subr.mxu1 %v830_v0  ;;  %345 = vmatprep.subr.mxu0 %v830_v0 }
  0x73   : > { %557 = vmatpush2.msra.mxu1 %v274_v20  ;;  %346 = vmatpush2.msra.mxu0 %v274_v20 }
  0x74   : > { %534 = vmatprep.subr.mxu1 %v830_v0  ;;  %347 = vmatprep.subr.mxu0 %v830_v0 }
  0x75   : > { %558 = vmatpush2.msra.mxu1 %v273_v21  ;;  %348 = vmatpush2.msra.mxu0 %v273_v21 }
  0x76   : > { %535 = vmatprep.subr.mxu1 %v830_v0  ;;  %349 = vmatprep.subr.mxu0 %v830_v0 }
  0x77   : > { %559 = vmatpush2.msra.mxu1 %v272_v22  ;;  %350 = vmatpush2.msra.mxu0 %v272_v22 }
  0x78   : > { %536 = vmatprep.subr.mxu1 %v830_v0  ;;  %351 = vmatprep.subr.mxu0 %v830_v0 }
  0x79   : > { %560 = vmatpush2.msra.mxu1 %v271_v23  ;;  %352 = vmatpush2.msra.mxu0 %v271_v23 }
  0x7a   : > { %537 = vmatprep.subr.mxu1 %v830_v0  ;;  %509 = vmatprep.mubr.msk.f32.mxu1 %vm281_vm0, %v251_v24 }
  0x7b   : > { %561 = vmatpush2.msra.mxu1 %v270_v25  ;;  %353 = vmatprep.subr.mxu0 %v830_v0 }
  0x7c   : > { %361 = vmatmul.mubr.f32.vlgmr.msra.gmra.mxu1 %v250_v26  ;;  %354 = vmatpush2.msra.mxu0 %v270_v25 }
  0x7d   : > { %508 = vmatprep.mubr.msk.f32.mxu0 %vm281_vm0, %v249_v27  ;;  %510 = vmatprep.mubr.msk.f32.mxu1 %vm281_vm0, %v253_v28 }
  0x7e   : > { %356 = vmatmul.mubr.f32.vlgmr.msra.gmra.mxu0 %v248_v29 }
  0x80   : > { %366 = vmatmul.mubr.f32.gmra.mxu1 %v252_v30 }
 0x13c   : > { %v362_v32 = vpop.f32.mrf.mxu1 }
 0x13d   : > { %v363_v34 = vadd.f32 %v362_v32, %v279_v31 }
 0x13e   : > { %v357_v35 = vpop.f32.mrf.mxu0  ;;  %v364_v36 = vpop.f32.mrf.mxu1 }
 0x13f   : > { %372 = vst [vmem:[%s244_s22 + $0x8] sm:$0xff] %v363_v34  ;;  %v358_v38 = vadd.f32 %v357_v35, %v278_v33 }
 0x140   : > { %v359_v39 = vpop.f32.mrf.mxu0  ;;  %v367_v40 = vpop.f32.mrf.mxu1 }
 0x141   : > { %371 = vst [vmem:[%s244_s22] sm:$0xff] %v358_v38  ;;  %v368_v41 = vadd.f32 %v367_v40, %v280_v37 }
 0x142   : > { %v369_v42 = vpop.f32.mrf.mxu1 }
 0x143   : > { %373 = vst [vmem:[%s244_s22 + $0x10] sm:$0xff] %v368_v41 }
 0x144   : > { %750 = shalt.err (!%p747_p5)
}
 0x145   : > { %s751_s27 = scalar_lea.hbm %s1052_s8, 384  ;;  %s755_s6 = scalar_lea.hbm %s1103_s3, 768 }
 0x146   : > { %p752_p10 = scmp.ne.s32.totalorder %s1052_s8, %s751_s27  ;;  %p756_p6 = scmp.lt.s32.totalorder %s1052_s8, %s1103_s3 }
 0x147   : > { %p757_p12 = scmp.lt.s32.totalorder %s755_s6, %s751_s27 }
 0x148   : > { %p753_p1 = pnand %p752_p10, %p949_p7 }
 0x149   : > { %p758_p3 = por %p757_p12, %p756_p6 }
 0x14a   : > { %p754_p4 = pneg %p753_p1 }
 0x14c   : > { %p759_p8 = pnand %p758_p3, %p754_p4 }
 0x14e   : > { %762 = shalt.err (!%p759_p8)
}
 0x14f   : > { %s832_s22 = smov 128   ;;  %s833_s28 = smov 8  }
 0x150   : > { %577 = dma.vmem_to_hbm [thread:$0]  (%p949_p7), %s1047_s24, 384, %s1052_s8, %s375_s15, %s832_s22, %s832_s22, %s833_s28  }
 0x151 PF: > { %s405_s5 = sand.u32 1, %s801_s12   ;;  %p1117_p9 = scmp.ne.s32.totalorder %s1110_s23, 0 }
 0x152   : > { %p1118_p11 = scmp.ge.s32.totalorder %s821_s17, 2  ;;  %s406_s7 = scalar_lea.sflag [#allocation4], %s405_s5 }
 0x154   : > { %p591_p2 = pnand %p1118_p11, %p1117_p9 }
 0x156   : > { %p592_p13 = pneg %p591_p2 }
 0x158   : > { %796 = dma.done.wait (%p592_p13), %s406_s7, 384  }
 0x159   : > { %798 = vsyncadd (%p592_p13), %s406_s7, 4294966912  ;;  %s20_s17 = sadd.s32 1, %s821_s17   ;;  %s1119_s12 = smov %s805_s13 }
 0x15a   : > { %p17_p0 = scmp.ge.s32.totalorder %s20_s17, 4   ;;  %s1120_s13 = smov %s809_s14 }
 0x15b   : > { %s1121_s14 = smov %s961_s29  ;;  %s1122_s15 = smov %s817_s16 }
 0x15c   : > { %s1123_s16 = smov %s1125_s11  ;;  %19 = sbr.rel (!%p17_p0) target bundleno = 7 (0x7), region = 86 }
 0x161   :  { %411 = vsyncpa [#allocation3], 1 }
 0x162   :  { %413 = vsyncpa [#allocation3 + $0x1], 1 }
 0x163   :  { %414 = vsyncpa [#allocation6], 1 }
 0x164   :  { %415 = vsyncpa [#allocation4], 1 }
 0x165   :  { %417 = vsyncpa [#allocation4 + $0x1], 1 }

</bundles_post_ra>
